<compile_context>
chip_gen: v7x
topology: tpu7x:2x2x1
jax: 0.10.0
libtpu: 0.0.40
codegen_flags: <defaults>
</compile_context>

<pallas_src>
import functools

import jax
import jax.numpy as jnp
from jax.experimental import pallas as pl
from jax.experimental.pallas import tpu as pltpu


def _round_up(x, m):
    return ((x + m - 1) // m) * m


def _one_minus_pt_pow(pt, gamma):
    """(1 - pt)**gamma.  Integer gamma -> repeated multiplies (no pow on the
    single EUP slot); non-integer gamma clamps tiny negative rounding of
    (1 - pt) before the pow to avoid NaN."""
    g = float(gamma)
    if g == 0.0:
        return jnp.ones_like(pt)
    base = 1.0 - pt
    if g.is_integer() and 0 < g <= 16:
        gi = int(g)
        acc, b = None, base
        while gi:
            if gi & 1:
                acc = b if acc is None else acc * b
            gi >>= 1
            if gi:
                b = b * b
        return acc
    return jnp.maximum(base, 0.0) ** jnp.float32(g)


def _focal_loss_kernel(logits_ref, side_ref, out_ref, *, gamma, per_sample):
    # logits_ref: (C, T)  logits for T samples, batch on the lane axis.
    # side_ref:   (2, T)  f32; row 0 = int32 targets bitcast to f32, row 1 = w_t.
    x = logits_ref[...].astype(jnp.float32)                  # (C, T)
    t = pltpu.bitcast(side_ref[0:1, :], jnp.int32)           # (1, T) int32
    wt = side_ref[1:2, :]                                     # (1, T) f32

    # Numerically stable log-sum-exp over the class (sublane) axis.
    m = jnp.max(x, axis=0, keepdims=True)                     # (1, T)
    xm = x - m
    sum_e = jnp.sum(jnp.exp(xm), axis=0, keepdims=True)       # (1, T)

    # (x[target] - m) via one-hot select + sublane reduce; log_p never built.
    # Out-of-range targets (>= C) select nothing -> ce = wt*lse (documented UB).
    cls = jax.lax.broadcasted_iota(jnp.int32, x.shape, 0)     # (C, T)
    x_t_m = jnp.sum(jnp.where(cls == t, xm, 0.0), axis=0, keepdims=True)

    ce = wt * (jnp.log(sum_e) - x_t_m)                        # weighted CE (>= 0)
    pt = jnp.exp(-ce)
    fl = _one_minus_pt_pow(pt, gamma) * ce                    # alpha folded outside

    if per_sample:
        out_ref[...] = fl                                     # (1, T)
    else:
        # Lane-dense (1, 128) partial: unmasked full-lane store, tiny writeback.
        ncol = fl.shape[1]
        part = fl[:, 0:128]
        for j in range(1, ncol // 128):
            part = part + fl[:, j * 128:(j + 1) * 128]
        out_ref[...] = part


def focal_loss(logits, targets, class_weights=None, gamma=2.0, alpha=0.25,
               reduction="mean", tile_cols=None):
    """Pallas FocalLoss forward.  logits (N, C) f32/bf16 with C >= 2,
    targets (N,) int."""
    N, C = logits.shape
    if C < 2:
        # TODO(synk): single-logit BCE-with-logits branch not implemented.
        raise NotImplementedError("binary (C==1) branch not implemented")
    itemsize = jnp.dtype(logits.dtype).itemsize

    # ---- layout-aware tile selection --------------------------------------
    # Per-column VMEM footprint: sublane-padded logits block (double-buffered),
    # the packed (2 -> 8 sublane, T) side block (double-buffered), and ~4
    # materialized f32 (C, T) temporaries inside the kernel.
    c_vmem = _round_up(C, 8)
    bytes_per_col = (2 * c_vmem * itemsize      # logits block x 2 buffers
                     + 2 * 8 * 4                # side block x 2 buffers
                     + 4 * c_vmem * 4)          # in-kernel f32 temporaries
    if tile_cols is None:
        budget = 20 << 20                       # fits 32 MiB scoped VMEM on v5e/v6e/v7x
        tile_cols = budget // bytes_per_col
    tile_cols = int(max(128, min(16384, (int(tile_cols) // 128) * 128)))

    n_cols = _round_up(N, 128)
    # Keep >= 4 tiles when the batch allows it so both v7x TensorCores get work.
    if n_cols >= 4 * 128:
        tile_cols = min(tile_cols, max(128, (n_cols // 4) // 128 * 128))
    tile_cols = min(tile_cols, n_cols)
    num_tiles = pl.cdiv(n_cols, tile_cols)
    n_pad = num_tiles * tile_cols
    pad = n_pad - N

    # ---- side input: per-row class weight + targets packed into one stream.
    targets_i = targets.astype(jnp.int32)
    if class_weights is not None:
        w_t = class_weights.astype(jnp.float32)[targets_i]
    else:
        w_t = jnp.ones((N,), jnp.float32)
    if pad:
        targets_i = jnp.pad(targets_i, (0, pad))
        w_t = jnp.pad(w_t, (0, pad))            # padded cols -> weight 0 -> fl 0
        logits = jnp.pad(logits, ((0, pad), (0, 0)))
    logits_t = logits.T                         # (C, n_pad): batch on lanes
    side = jnp.stack(
        [jax.lax.bitcast_convert_type(targets_i, jnp.float32), w_t], axis=0)

    per_sample = reduction not in ("mean", "sum")
    kernel = functools.partial(_focal_loss_kernel, gamma=gamma,
                               per_sample=per_sample)

    if per_sample:
        out_shape = jax.ShapeDtypeStruct((1, n_pad), jnp.float32)
        out_spec = pl.BlockSpec((1, tile_cols), lambda i: (0, i))
    else:
        out_shape = jax.ShapeDtypeStruct((num_tiles, 128), jnp.float32)
        out_spec = pl.BlockSpec((1, 128), lambda i: (i, 0))

    est_vmem = tile_cols * bytes_per_col + (256 << 10)
    vmem_limit = int(min(32 << 20, max(8 << 20, 2 * est_vmem)))

    out = pl.pallas_call(
        kernel,
        out_shape=out_shape,
        grid_spec=pltpu.PrefetchScalarGridSpec(
            num_scalar_prefetch=0,
            grid=(num_tiles,),
            in_specs=[
                pl.BlockSpec((C, tile_cols), lambda i: (0, i)),   # logits^T
                pl.BlockSpec((2, tile_cols), lambda i: (0, i)),   # targets|w_t
            ],
            out_specs=out_spec,
        ),
        compiler_params=pltpu.CompilerParams(
            dimension_semantics=("parallel",),
            vmem_limit_bytes=vmem_limit),
    )(logits_t, side)

    a = jnp.float32(1.0 if alpha is None else alpha)
    if per_sample:                               # reduction='none'
        return a * out[0, :N]
    total = a * jnp.sum(out)
    if reduction == "mean":
        return total / jnp.float32(N)
    return total                                 # reduction='sum'


def focal_loss_ref(logits, targets, class_weights=None, gamma=2.0, alpha=0.25,
                   reduction="mean"):
    """Pure-JAX reference mirroring the PyTorch module."""
    logits = logits.astype(jnp.float32)
    log_p = jax.nn.log_softmax(logits, axis=-1)
    n = logits.shape[0]
    picked = log_p[jnp.arange(n), targets]
    if class_weights is None:
        w_t = jnp.ones((n,), jnp.float32)
    else:
        w_t = class_weights.astype(jnp.float32)[targets]
    ce = -w_t * picked
    pt = jnp.exp(-ce)
    fl = (1.0 - pt) ** gamma * ce
    if alpha is not None:
        fl = alpha * fl
    if reduction == "mean":
        return jnp.mean(fl)
    if reduction == "sum":
        return jnp.sum(fl)
    return fl


if __name__ == "__main__":
    key = jax.random.PRNGKey(0)
    k1, k2, k3, k4, k5, k6 = jax.random.split(key, 6)

    # Case 1: small batch, class weights, default integer gamma, mean.
    N, C = 16, 4
    logits = jax.random.normal(k1, (N, C), dtype=jnp.float32)
    targets = jax.random.randint(k2, (N,), 0, C, dtype=jnp.int32)
    class_weights = jnp.array([1.0, 2.0, 0.5, 1.5], dtype=jnp.float32)
    out = jax.block_until_ready(
        focal_loss(logits, targets, class_weights=class_weights,
                   gamma=2.0, alpha=0.25))
    ref = focal_loss_ref(logits, targets, class_weights=class_weights,
                         gamma=2.0, alpha=0.25)
    assert jnp.allclose(out, ref, rtol=1e-5, atol=1e-6), (out, ref)

    # Case 2: ragged batch over several 128-wide tiles, non-integer gamma,
    # no class weights, no alpha, reduction='sum'.
    N2, C2 = 300, 6
    logits2 = jax.random.normal(k3, (N2, C2), dtype=jnp.float32)
    targets2 = jax.random.randint(k4, (N2,), 0, C2, dtype=jnp.int32)
    out2 = jax.block_until_ready(
        focal_loss(logits2, targets2, gamma=1.5, alpha=None,
                   reduction="sum", tile_cols=128))
    ref2 = focal_loss_ref(logits2, targets2, gamma=1.5, alpha=None,
                          reduction="sum")
    assert jnp.allclose(out2, ref2, rtol=1e-5, atol=1e-5), (out2, ref2)

    # Case 3: bf16 logits, per-sample output (reduction='none').
    N3, C3 = 40, 4
    logits3 = jax.random.normal(k5, (N3, C3), dtype=jnp.bfloat16)
    targets3 = jax.random.randint(k6, (N3,), 0, C3, dtype=jnp.int32)
    out3 = jax.block_until_ready(
        focal_loss(logits3, targets3, class_weights=class_weights,
                   gamma=2.0, alpha=0.25, reduction="none"))
    ref3 = focal_loss_ref(logits3, targets3, class_weights=class_weights,
                          gamma=2.0, alpha=0.25, reduction="none")
    assert out3.shape == (N3,)
    assert jnp.allclose(out3, ref3, rtol=1e-4, atol=1e-5), (out3, ref3)

    print("KERNEL_OK")
</pallas_src>

<mosaic_0001>
module attributes {stable_mosaic.version = 11 : i64} {
  func.func @_focal_loss_kernel(%arg0: i32, %arg1: memref<4x128xf32, #tpu.memory_space<vmem>>, %arg2: memref<2x128xf32, #tpu.memory_space<vmem>>, %arg3: memref<1x128xf32, #tpu.memory_space<vmem>>) attributes {dimension_semantics = [#tpu.dimension_semantics<parallel>], iteration_bounds = array<i64: 1>, scalar_prefetch = 0 : i64, scratch_operands = 0 : i64, tpu.core_type = #tpu.core_type<tc>, window_params = [{transform_indices = @transform_0, window_bounds = array<i64: 4, 128>}, {transform_indices = @transform_1, window_bounds = array<i64: 2, 128>}, {transform_indices = @transform_2, window_bounds = array<i64: 1, 128>}]} {
    %c0 = arith.constant 0 : index
    %c0_0 = arith.constant 0 : index
    %0 = vector.load %arg1[%c0, %c0_0] : memref<4x128xf32, #tpu.memory_space<vmem>>, vector<4x128xf32>
    %c0_1 = arith.constant 0 : index
    %c0_2 = arith.constant 0 : index
    %1 = vector.load %arg2[%c0_1, %c0_2] : memref<2x128xf32, #tpu.memory_space<vmem>>, vector<1x128xf32>
    %2 = tpu.bitcast %1 : vector<1x128xf32> -> vector<1x128xi32>
    %c1 = arith.constant 1 : index
    %c0_3 = arith.constant 0 : index
    %3 = vector.load %arg2[%c1, %c0_3] : memref<2x128xf32, #tpu.memory_space<vmem>>, vector<1x128xf32>
    %cst = arith.constant dense<0xFF800000> : vector<128xf32>
    %4 = vector.multi_reduction <maximumf>, %0, %cst [0] : vector<4x128xf32> to vector<128xf32>
    %5 = vector.shape_cast %4 : vector<128xf32> to vector<1x128xf32>
    %6 = vector.broadcast %5 : vector<1x128xf32> to vector<4x128xf32>
    %7 = arith.subf %0, %6 : vector<4x128xf32>
    %8 = math.exp %7 : vector<4x128xf32>
    %cst_4 = arith.constant dense<0.000000e+00> : vector<128xf32>
    %9 = vector.multi_reduction <add>, %8, %cst_4 [0] : vector<4x128xf32> to vector<128xf32>
    %10 = vector.shape_cast %9 : vector<128xf32> to vector<1x128xf32>
    %11 = tpu.iota {dimensions = array<i32: 0>} : vector<4x128xi32>
    %12 = vector.broadcast %2 : vector<1x128xi32> to vector<4x128xi32>
    %13 = arith.cmpi eq, %11, %12 : vector<4x128xi32>
    %cst_5 = arith.constant 0.000000e+00 : f32
    %14 = vector.broadcast %cst_5 : f32 to vector<4x128xf32>
    %15 = arith.select %13, %7, %14 : vector<4x128xi1>, vector<4x128xf32>
    %cst_6 = arith.constant dense<0.000000e+00> : vector<128xf32>
    %16 = vector.multi_reduction <add>, %15, %cst_6 [0] : vector<4x128xf32> to vector<128xf32>
    %17 = vector.shape_cast %16 : vector<128xf32> to vector<1x128xf32>
    %18 = math.log %10 : vector<1x128xf32>
    %19 = arith.subf %18, %17 : vector<1x128xf32>
    %20 = arith.mulf %3, %19 : vector<1x128xf32>
    %cst_7 = arith.constant 0.000000e+00 : f32
    %21 = vector.broadcast %cst_7 : f32 to vector<1x128xf32>
    %22 = arith.subf %21, %20 : vector<1x128xf32>
    %23 = math.exp %22 : vector<1x128xf32>
    %cst_8 = arith.constant 1.000000e+00 : f32
    %24 = vector.broadcast %cst_8 : f32 to vector<1x128xf32>
    %25 = arith.subf %24, %23 : vector<1x128xf32>
    %26 = arith.mulf %25, %25 : vector<1x128xf32>
    %27 = arith.mulf %26, %20 : vector<1x128xf32>
    %c0_9 = arith.constant 0 : index
    %c0_10 = arith.constant 0 : index
    %28 = vector.load %arg3[%c0_9, %c0_10] : memref<1x128xf32, #tpu.memory_space<vmem>>, vector<1x128xf32>
    tpu.vector_store %arg3[%c0_9, %c0_10], %27 {strides = array<i32>} : memref<1x128xf32, #tpu.memory_space<vmem>>, vector<1x128xf32>,
    return
  }
  func.func @transform_0(%arg0: i32) -> (i32, i32) {
    %c0_i32 = arith.constant 0 : i32
    %c0_i32_0 = arith.constant 0 : i32
    return %c0_i32, %arg0 : i32, i32
  }
  func.func @transform_1(%arg0: i32) -> (i32, i32) {
    %c0_i32 = arith.constant 0 : i32
    %c0_i32_0 = arith.constant 0 : i32
    return %c0_i32, %arg0 : i32, i32
  }
  func.func @transform_2(%arg0: i32) -> (i32, i32) {
    %c0_i32 = arith.constant 0 : i32
    %c0_i32_0 = arith.constant 0 : i32
    return %arg0, %c0_i32 : i32, i32
  }
}

</mosaic_0001>

<bundles_post_ra>
// kernel: tpu_custom_call.1
= control target key start
LH: loop header
LB: loop body
LE: loop exit
PB: predicated region body
PF: predicated region fallthrough
CT: control target
= control target key end

     0   :  { %7 = vsyncpa [#allocation3], 0  ;;  %s194_s0 = inlined_call_operand.hbm [shape: f32[4,128], index: 0, kind: input, shape index: {}]   ;;  %s195_s1 = inlined_call_operand.vmem [shape: f32[2,128], index: 1, kind: input, shape index: {}]   ;;  %s196_s2 = inlined_call_operand.hbm [shape: f32[1,128], index: 2, kind: output, shape index: {}]  }
   0x1   :  { %8 = vsyncpa [#allocation4], 0  ;;  %s144_s9 = smov [#allocation2]   ;;  %s96_s13 = scalar_lea.hbm %s194_s0, 64 }
   0x2   :  { %s15_s10 = sshll.u32 %s144_s9, 4  ;;  %p97_p0 = scmp.ne.s32.totalorder %s194_s0, %s96_s13  ;;  %s16_s10 = int_to_ptr.vmem [resolvable:$true] %s15_s10 }
   0x3   :  { %p100_p1 = scmp.lt.u32.totalorder %s96_s13, %s194_s0 }
   0x5   :  { %p102_p2 = pnand %p100_p1, %p97_p0 }
   0x7   :  { %105 = shalt.err (!%p102_p2)
}
   0x8   :  { %s106_s18 = scalar_lea.vmem %s16_s10, 64  ;;  %p111_p4 = scmp.lt.s32.totalorder %s16_s10, %s16_s10 }
   0x9   :  { %p107_p3 = scmp.ne.s32.totalorder %s16_s10, %s106_s18  ;;  %p112_p5 = scmp.lt.s32.totalorder %s106_s18, %s106_s18 }
   0xb   :  { %p113_p6 = por %p112_p5, %p111_p4 }
   0xd   :  { %p114_p7 = pnand %p113_p6, %p107_p3 }
   0xf   :  { %117 = shalt.err (!%p114_p7)
}
  0x10   :  { %18 = dma.hbm_to_vmem [thread:$0]  %s194_s0, 64, %s16_s10, [#allocation3]  }
  0x11   :  { %140 = dma.done.wait [#allocation3], 64  }
  0x12   :  { %141 = vsyncadd [#allocation3], 4294967232  ;;  %vm28_vm0 = vcmask 1043456   ;;  %v24_v0 = vld [vmem:[#allocation2] sm:$0xf]  ;;  %v46_v9 = vlaneseq  ;;  %s145_s24 = smov [#allocation5]  }
  0x13   :  { %v29_v1 = vsel %vm28_vm0, %v24_v0, -inf  ;;  %v87_v12 = vld [vmem:[%s195_s1] ss:$0 sm:$0xff]  ;;  %v27_v31 = vld [vmem:[%s195_s1 + $0x1] sm:$0x1]  ;;  %s78_s25 = sshll.u32 %s145_s24, 4  ;;  %s79_s25 = int_to_ptr.vmem [resolvable:$true] %s78_s25 }
  0x14   :  { %v30_v2 = vrot.slane %v29_v1, 4  ;;  %v47_v11 = vshrl.u32 %v46_v9, 7  ;;  %s118_s26 = scalar_lea.vmem %s79_s25, 16  ;;  %s122_s27 = scalar_lea.vmem %s79_s25, 32 }
  0x15   :  { %p119_p8 = scmp.ne.s32.totalorder %s79_s25, %s118_s26  ;;  %p123_p9 = scmp.lt.s32.totalorder %s79_s25, %s79_s25 }
  0x16   :  { %v31_v3 = vmax.f32 %v29_v1, %v30_v2  ;;  %vm52_vm1 = vcmp.eq.s32.totalorder %v47_v11, %v87_v12  ;;  %p124_p10 = scmp.lt.s32.totalorder %s122_s27, %s118_s26 }
  0x18   :  { %v32_v4 = vrot.slane %v31_v3, 2  ;;  %p125_p11 = por %p124_p10, %p123_p9 }
  0x1a   :  { %v33_v5 = vmax.f32 %v31_v3, %v32_v4  ;;  %p126_p12 = pnand %p125_p11, %p119_p8 }
  0x1c   :  { %v34_v6 = vrot.slane %v33_v5, 1 }
  0x1e   :  { %v35_v7 = vmax.f32 %v33_v5, %v34_v6 }
  0x20   :  { %v36_v8 = vsub.f32 %v24_v0, %v35_v7 }
  0x22   :  { %v37_v10 = vmul.f32 1.442695, %v36_v8  ;;  %v53_v13 = vsel %vm52_vm1, %v36_v8, 0.0 }
  0x23   :  { %v54_v15 = vsel %vm28_vm0, %v53_v13, 0.0 }
  0x24   :  { %90 = vpow2.f32 %v37_v10  ;;  %v55_v18 = vrot.slane %v54_v15, 4 }
  0x26   :  { %v56_v21 = vadd.f32 %v55_v18, %v54_v15 }
  0x28   :  { %v57_v24 = vrot.slane %v56_v21, 2 }
  0x2a   :  { %v58_v26 = vadd.f32 %v57_v24, %v56_v21 }
  0x2c   :  { %v59_v27 = vrot.slane %v58_v26, 1 }
  0x2e   :  { %v91_v14 = vpop.eup %90  ;;  %v60_v28 = vadd.f32 %v59_v27, %v58_v26 }
  0x2f   :  { %v39_v16 = vsel %vm28_vm0, %v91_v14, 0.0 }
  0x30   :  { %v40_v17 = vrot.slane %v39_v16, 4 }
  0x32   :  { %v41_v19 = vadd.f32 %v40_v17, %v39_v16 }
  0x34   :  { %v42_v20 = vrot.slane %v41_v19, 2 }
  0x36   :  { %v43_v22 = vadd.f32 %v42_v20, %v41_v19 }
  0x38   :  { %v44_v23 = vrot.slane %v43_v22, 1 }
  0x3a   :  { %v45_v25 = vadd.f32 %v44_v23, %v43_v22 }
  0x3c   :  { %92 = vlog2.f32 %v45_v25 }
  0x46   :  { %v93_v29 = vpop.eup %92 }
  0x47   :  { %v62_v30 = vmul.f32 0.6931472, %v93_v29 }
  0x49   :  { %v63_v32 = vsub.f32 %v62_v30, %v60_v28 }
  0x4b   :  { %v64_v33 = vmul.f32 %v63_v32, %v27_v31 }
  0x4d   :  { %v65_v34 = vsub.f32 0.0, %v64_v33 }
  0x4f   :  { %v66_v35 = vmul.f32 1.442695, %v65_v34 }
  0x51   :  { %94 = vpow2.f32 %v66_v35 }
  0x5b   :  { %v95_v36 = vpop.eup %94 }
  0x5c   :  { %v68_v37 = vsub.f32 1.0, %v95_v36 }
  0x5e   :  { %v69_v38 = vmul.f32 %v68_v37, %v68_v37 }
  0x60   :  { %v70_v39 = vmul.f32 %v69_v38, %v64_v33 }
  0x62   :  { %71 = vst [vmem:[#allocation5] sm:$0x1] %v70_v39 }
  0x63   :  { %129 = shalt.err (!%p126_p12)
}
  0x64   :  { %s130_s29 = scalar_lea.hbm %s196_s2, 16 }
  0x65   :  { %p131_p13 = scmp.ne.s32.totalorder %s196_s2, %s130_s29  ;;  %p134_p0 = scmp.lt.u32.totalorder %s130_s29, %s196_s2 }
  0x67   :  { %p136_p1 = pnand %p134_p0, %p131_p13 }
  0x69   :  { %139 = shalt.err (!%p136_p1)
}
  0x6a   :  { %81 = dma.vmem_to_hbm [thread:$0]  %s79_s25, 16, %s196_s2, [#allocation4]  }
  0x6b   :  { %142 = dma.done.wait [#allocation4], 16  }
  0x6c   :  { %143 = vsyncadd [#allocation4], 4294967280 }
  0x6d   :  { %85 = vsyncpa [#allocation3], 1 }
  0x6e   :  { %86 = vsyncpa [#allocation4], 1 }

</bundles_post_ra>
